<compile_context>
chip_gen: v6e
topology: v6e:2x2x1
jax: 0.10.0
libtpu: 0.0.40
codegen_flags: <defaults>
</compile_context>

<pallas_src>
import functools

import jax
import jax.numpy as jnp
from jax import lax
from jax.experimental import pallas as pl
from jax.experimental.pallas import tpu as pltpu


def _round_up(v, m):
    return (v + m - 1) // m * m


def _pick_batch_block(B_p):
    """Largest multiple of 16 that divides B_p and is <= 128 (MXU-height-ish),
    preferring >= 2 chunks when B_p allows (v7x megacore sharding)."""
    candidates = [c for c in range(16, min(128, B_p) + 1, 16) if B_p % c == 0]
    if not candidates:
        return B_p
    best = max(candidates)
    if best == B_p and B_p >= 32:
        smaller = [c for c in candidates if c < B_p]
        if smaller:
            best = max(smaller)
    return best


def rnn_kernel(x_ref, w_ih_ref, w_hh_ref, b_ref, w_fc_ref, b_fc_ref,
               out_ref, h_ref, p_ref, *, ts, b_blk, seq_len, ragged, unroll):
    # x_ref:    (ts*b_blk, I_p)  bf16  time-major rows for this (batch-chunk, time-block)
    # w_ih_ref: (I_p, H_p) bf16, w_hh_ref: (H_p, H_p) bf16
    # b_ref:    (1, H_p)   f32  (combined b_ih + b_hh)
    # w_fc_ref: (H_p, O_p) bf16, b_fc_ref: (1, O_p) f32
    # out_ref:  (b_blk, O_p) f32 (written only on the last time block)
    # h_ref:    (b_blk, H_p)    f32 VMEM scratch: hidden-state carry across time blocks
    # p_ref:    (ts*b_blk, H_p) f32 VMEM scratch: staged input projection for this block
    tb = pl.program_id(1)

    @pl.when(tb == 0)
    def _init():
        h_ref[...] = jnp.zeros_like(h_ref)

    # Hoisted input projection: one tall MXU GEMM covering all `ts` timesteps of this block,
    # staged in VMEM so the serial loop below only pulls (b_blk, H_p) slabs per step.
    p_ref[...] = jnp.dot(x_ref[...], w_ih_ref[...],
                         preferred_element_type=jnp.float32) + b_ref[...]

    w_hh = w_hh_ref[...]                    # bf16, VMEM-resident
    base = tb * ts                          # global time offset of this block

    def step(t, h):
        off = pl.multiple_of(t * b_blk, b_blk)
        p_t = p_ref[pl.ds(off, b_blk), :]                           # (b_blk, H_p) f32
        rec = jnp.dot(h.astype(w_hh.dtype), w_hh,
                      preferred_element_type=jnp.float32)           # (b_blk, H_p) f32
        h_new = jnp.tanh(p_t + rec)
        if ragged:
            # Tail time block may contain zero-padded timesteps: keep h unchanged there.
            h_new = jnp.where(base + t < seq_len, h_new, h)
        return h_new

    h = lax.fori_loop(0, ts, step, h_ref[...], unroll=unroll)
    h_ref[...] = h

    @pl.when(tb == pl.num_programs(1) - 1)
    def _final():
        y = jnp.dot(h.astype(w_fc_ref.dtype), w_fc_ref[...],
                    preferred_element_type=jnp.float32) + b_fc_ref[...]
        out_ref[...] = y.astype(out_ref.dtype)


def rnn_forward(x, params, *, time_block=None, batch_block=None,
                compute_dtype=jnp.bfloat16):
    """x: (B, S, I) batch-first f32 (as in the torch module). Returns (B, O) f32."""
    w_ih, w_hh, b_ih, b_hh, w_fc, b_fc = params
    B, S, I = x.shape
    H = w_hh.shape[0]
    O = w_fc.shape[1]

    f32 = jnp.float32
    cd = compute_dtype

    # Lane/sublane-dense padded sizes (B padded to 16 -> full packed bf16 vreg height).
    I_p = _round_up(I, 128)
    H_p = _round_up(H, 128)
    O_p = _round_up(O, 128)
    B_p = _round_up(B, 16)

    # Batch tile: toward MXU height, preferring >=2 chunks (v7x two-TC sharding).
    b_blk = _pick_batch_block(B_p) if batch_block is None else batch_block
    assert B_p % b_blk == 0 and b_blk % 8 == 0
    nb = B_p // b_blk        # "parallel" grid axis

    # Time block from a VMEM budget: double-buffered bf16 x block + f32 p scratch <= ~4 MiB.
    if time_block is None:
        budget = 4 * 1024 * 1024
        per_t = b_blk * (2 * 2 * I_p + 4 * H_p)      # bytes per timestep (x dbl-buf + p)
        time_block = max(1, min(128, budget // per_t, S))
    ts = int(time_block)
    nt = pl.cdiv(S, ts)      # "arbitrary" grid axis (serial recurrence, pipelined x DMA)
    S_pad = nt * ts
    ragged = (S_pad != S)
    unroll = max(d for d in (8, 4, 2, 1) if ts % d == 0)

    def pad2(a, r, c):
        return jnp.pad(a.astype(f32), ((0, r - a.shape[0]), (0, c - a.shape[1])))

    # Zero-padded weights (zero rows/cols keep padded hidden/output lanes exactly 0).
    w_ih_p = pad2(w_ih, I_p, H_p).astype(cd)
    w_hh_p = pad2(w_hh, H_p, H_p).astype(cd)
    w_fc_p = pad2(w_fc, H_p, O_p).astype(cd)
    b_p = pad2(b_ih + b_hh, 1, H_p)          # f32 combined recurrent bias
    b_fc_p = pad2(b_fc, 1, O_p)              # f32

    # x: (B,S,I) -> zero-pad -> per-batch-chunk, time-major row slab (nb, S_pad*b_blk, I_p).
    # (Single fused XLA pre-pass; padded tail timesteps are zeros and masked in-kernel.)
    x_p = jnp.pad(x, ((0, B_p - B), (0, S_pad - S), (0, I_p - I))).astype(cd)
    x_p = x_p.reshape(nb, b_blk, S_pad, I_p)
    x_p = jnp.transpose(x_p, (0, 2, 1, 3)).reshape(nb, S_pad * b_blk, I_p)

    # Explicit VMEM budget (set limit so large ts doesn't fall off the fast path; 64 MiB cap
    # keeps the same settings valid on v7x's per-TC VMEM).
    weight_bytes = 2 * ((I_p * H_p + H_p * H_p + H_p * O_p) * 2 + (H_p + O_p) * 4)
    x_block_bytes = 2 * ts * b_blk * I_p * 2
    p_bytes = ts * b_blk * H_p * 4
    h_bytes = b_blk * H_p * 4
    out_bytes = 2 * b_blk * O_p * 4
    vmem_needed = weight_bytes + x_block_bytes + p_bytes + h_bytes + out_bytes
    vmem_limit = int(min(max(2 * vmem_needed, 32 * 1024 * 1024), 64 * 1024 * 1024))

    flops = 2 * S_pad * B_p * (I_p + H_p) * H_p + 2 * B_p * H_p * O_p
    transcendentals = S_pad * B_p * H_p
    bytes_accessed = (x_p.size * x_p.dtype.itemsize
                      + w_ih_p.size * w_ih_p.dtype.itemsize
                      + w_hh_p.size * w_hh_p.dtype.itemsize
                      + w_fc_p.size * w_fc_p.dtype.itemsize
                      + (b_p.size + b_fc_p.size) * 4
                      + B_p * O_p * 4)

    kernel = functools.partial(rnn_kernel, ts=ts, b_blk=b_blk, seq_len=S,
                               ragged=ragged, unroll=unroll)

    out_p = pl.pallas_call(
        kernel,
        out_shape=jax.ShapeDtypeStruct((B_p, O_p), f32),
        grid_spec=pltpu.PrefetchScalarGridSpec(
            num_scalar_prefetch=0,
            grid=(nb, nt),
            in_specs=[
                # x: one time block per grid step (pipelined / double-buffered by Pallas)
                pl.BlockSpec((None, ts * b_blk, I_p), lambda bb, tb: (bb, tb, 0)),
                # weights & biases: constant index maps -> fetched once, VMEM-resident
                pl.BlockSpec((I_p, H_p), lambda bb, tb: (0, 0)),
                pl.BlockSpec((H_p, H_p), lambda bb, tb: (0, 0)),
                pl.BlockSpec((1, H_p), lambda bb, tb: (0, 0)),
                pl.BlockSpec((H_p, O_p), lambda bb, tb: (0, 0)),
                pl.BlockSpec((1, O_p), lambda bb, tb: (0, 0)),
            ],
            out_specs=pl.BlockSpec((b_blk, O_p), lambda bb, tb: (bb, 0)),
            scratch_shapes=[
                pltpu.VMEM((b_blk, H_p), f32),          # hidden-state carry
                pltpu.VMEM((ts * b_blk, H_p), f32),     # staged input projection p
            ],
        ),
        compiler_params=pltpu.CompilerParams(
            dimension_semantics=("parallel", "arbitrary"),
            vmem_limit_bytes=vmem_limit),
        cost_estimate=pl.CostEstimate(
            flops=flops, transcendentals=transcendentals,
            bytes_accessed=bytes_accessed),
    )(x_p, w_ih_p, w_hh_p, b_p, w_fc_p, b_fc_p)

    return out_p[:B, :O]


def init_params(key, input_size, hidden_size, output_size):
    """Deterministic init mimicking PyTorch's uniform(-1/sqrt(H), 1/sqrt(H)).
    Weights are stored pre-transposed: W_ih (I,H), W_hh (H,H), W_fc (H,O)."""
    ks = jax.random.split(key, 6)
    kH = 1.0 / jnp.sqrt(hidden_size)
    w_ih = jax.random.uniform(ks[0], (input_size, hidden_size), jnp.float32, -kH, kH)
    w_hh = jax.random.uniform(ks[1], (hidden_size, hidden_size), jnp.float32, -kH, kH)
    b_ih = jax.random.uniform(ks[2], (1, hidden_size), jnp.float32, -kH, kH)
    b_hh = jax.random.uniform(ks[3], (1, hidden_size), jnp.float32, -kH, kH)
    w_fc = jax.random.uniform(ks[4], (hidden_size, output_size), jnp.float32, -kH, kH)
    b_fc = jax.random.uniform(ks[5], (1, output_size), jnp.float32, -kH, kH)
    return w_ih, w_hh, b_ih, b_hh, w_fc, b_fc


def rnn_reference(x, params):
    """Pure f32 JAX reference matching the torch module semantics."""
    w_ih, w_hh, b_ih, b_hh, w_fc, b_fc = params
    B, S, I = x.shape
    H = w_hh.shape[0]
    h = jnp.zeros((B, H), jnp.float32)
    for t in range(S):
        h = jnp.tanh(x[:, t, :] @ w_ih + h @ w_hh + b_ih + b_hh)
    return h @ w_fc + b_fc


def rnn_reference_mixed(x, params, compute_dtype=jnp.bfloat16):
    """Reference that mimics the kernel's mixed precision (bf16 operands, f32 accumulate)."""
    w_ih, w_hh, b_ih, b_hh, w_fc, b_fc = params
    cd = compute_dtype
    B, S, I = x.shape
    H = w_hh.shape[0]
    b = (b_ih + b_hh).astype(jnp.float32)
    xw = x.astype(cd)
    wih, whh, wfc = w_ih.astype(cd), w_hh.astype(cd), w_fc.astype(cd)
    h = jnp.zeros((B, H), jnp.float32)
    for t in range(S):
        p = jnp.dot(xw[:, t, :], wih, preferred_element_type=jnp.float32) + b
        h = jnp.tanh(p + jnp.dot(h.astype(cd), whh, preferred_element_type=jnp.float32))
    return jnp.dot(h.astype(cd), wfc, preferred_element_type=jnp.float32) + b_fc


if __name__ == "__main__":
    batch, seq, input_size, hidden_size, output_size = 4, 8, 16, 32, 8

    key = jax.random.PRNGKey(0)
    kx, kp = jax.random.split(key)
    x = jax.random.normal(kx, (batch, seq, input_size), jnp.float32)
    params = init_params(kp, input_size, hidden_size, output_size)

    # Default path: VMEM-budget-derived ts (=8 here), single batch chunk of 16 padded rows.
    out = rnn_forward(x, params)
    out = jax.block_until_ready(out)
    assert out.shape == (batch, output_size)

    ref_mixed = rnn_reference_mixed(x, params)
    ref_f32 = rnn_reference(x, params)
    assert jnp.allclose(out, ref_mixed, atol=2e-3, rtol=2e-3), \
        "mismatch vs mixed-precision reference"
    assert jnp.allclose(out, ref_f32, atol=5e-2, rtol=5e-2), \
        "mismatch vs f32 reference (bf16 operand tolerance)"

    # Also exercise the ragged-tail path (ts does not divide S) with multiple time blocks.
    out_ragged = jax.block_until_ready(rnn_forward(x, params, time_block=3))
    assert jnp.allclose(out_ragged, ref_mixed, atol=2e-3, rtol=2e-3), \
        "mismatch vs mixed-precision reference (ragged time blocks)"

    print("KERNEL_OK")
</pallas_src>

<mosaic_0001>
module attributes {stable_mosaic.version = 11 : i64} {
  func.func @rnn_kernel(%arg0: i32, %arg1: i32, %arg2: memref<1x128x128xbf16, #tpu.memory_space<vmem>>, %arg3: memref<128x128xbf16, #tpu.memory_space<vmem>>, %arg4: memref<128x128xbf16, #tpu.memory_space<vmem>>, %arg5: memref<1x128xf32, #tpu.memory_space<vmem>>, %arg6: memref<128x128xbf16, #tpu.memory_space<vmem>>, %arg7: memref<1x128xf32, #tpu.memory_space<vmem>>, %arg8: memref<16x128xf32, #tpu.memory_space<vmem>>, %arg9: memref<16x128xf32, #tpu.memory_space<vmem>>, %arg10: memref<128x128xf32, #tpu.memory_space<vmem>>) attributes {dimension_semantics = [#tpu.dimension_semantics<parallel>, #tpu.dimension_semantics<arbitrary>], iteration_bounds = array<i64: 1, 1>, scalar_prefetch = 0 : i64, scratch_operands = 2 : i64, tpu.core_type = #tpu.core_type<tc>, window_params = [{transform_indices = @transform_0, window_bounds = array<i64: 1, 128, 128>}, {pipeline_mode = #tpu.pipeline_mode<synchronous>, transform_indices = @transform_1, window_bounds = array<i64: 128, 128>}, {pipeline_mode = #tpu.pipeline_mode<synchronous>, transform_indices = @transform_2, window_bounds = array<i64: 128, 128>}, {pipeline_mode = #tpu.pipeline_mode<synchronous>, transform_indices = @transform_3, window_bounds = array<i64: 1, 128>}, {pipeline_mode = #tpu.pipeline_mode<synchronous>, transform_indices = @transform_4, window_bounds = array<i64: 128, 128>}, {pipeline_mode = #tpu.pipeline_mode<synchronous>, transform_indices = @transform_5, window_bounds = array<i64: 1, 128>}, {transform_indices = @transform_6, window_bounds = array<i64: 16, 128>}]} {
    %c0_i32 = arith.constant 0 : i32
    %0 = arith.cmpi eq, %arg1, %c0_i32 : i32
    %1 = arith.extui %0 : i1 to i32
    %c0_i32_0 = arith.constant 0 : i32
    %2 = arith.cmpi ne, %1, %c0_i32_0 : i32
    scf.if %2 {
      %cst_41 = arith.constant 0.000000e+00 : f32
      %81 = vector.broadcast %cst_41 : f32 to vector<16x128xf32>
      %c0_42 = arith.constant 0 : index
      %c0_43 = arith.constant 0 : index
      %82 = vector.load %arg9[%c0_42, %c0_43] : memref<16x128xf32, #tpu.memory_space<vmem>>, vector<16x128xf32>
      tpu.vector_store %arg9[%c0_42, %c0_43], %81 {strides = array<i32>} : memref<16x128xf32, #tpu.memory_space<vmem>>, vector<16x128xf32>,
    } else {
    }
    %c0 = arith.constant 0 : index
    %c0_1 = arith.constant 0 : index
    %c0_2 = arith.constant 0 : index
    %3 = vector.load %arg2[%c0, %c0_1, %c0_2] : memref<1x128x128xbf16, #tpu.memory_space<vmem>>, vector<1x128x128xbf16>
    %4 = vector.shape_cast %3 : vector<1x128x128xbf16> to vector<128x128xbf16>
    %c0_3 = arith.constant 0 : index
    %c0_4 = arith.constant 0 : index
    %5 = vector.load %arg3[%c0_3, %c0_4] : memref<128x128xbf16, #tpu.memory_space<vmem>>, vector<128x128xbf16>
    %cst = arith.constant dense<0.000000e+00> : vector<128x128xf32>
    %6 = tpu.matmul %4, %5, %cst {dimension_numbers = #tpu.dot_dimension_numbers<[1], [0], [0], [1], [0, 0, 1, 1], [], []>} : vector<128x128xbf16>, vector<128x128xbf16>, vector<128x128xf32> -> vector<128x128xf32>
    %c0_5 = arith.constant 0 : index
    %c0_6 = arith.constant 0 : index
    %7 = vector.load %arg5[%c0_5, %c0_6] : memref<1x128xf32, #tpu.memory_space<vmem>>, vector<1x128xf32>
    %8 = vector.broadcast %7 : vector<1x128xf32> to vector<128x128xf32>
    %9 = arith.addf %6, %8 : vector<128x128xf32>
    %c0_7 = arith.constant 0 : index
    %c0_8 = arith.constant 0 : index
    %10 = vector.load %arg10[%c0_7, %c0_8] : memref<128x128xf32, #tpu.memory_space<vmem>>, vector<128x128xf32>
    tpu.vector_store %arg10[%c0_7, %c0_8], %9 {strides = array<i32>} : memref<128x128xf32, #tpu.memory_space<vmem>>, vector<128x128xf32>,
    %c0_9 = arith.constant 0 : index
    %c0_10 = arith.constant 0 : index
    %11 = vector.load %arg4[%c0_9, %c0_10] : memref<128x128xbf16, #tpu.memory_space<vmem>>, vector<128x128xbf16>
    %c0_11 = arith.constant 0 : index
    %c0_12 = arith.constant 0 : index
    %12 = vector.load %arg9[%c0_11, %c0_12] : memref<16x128xf32, #tpu.memory_space<vmem>>, vector<16x128xf32>
    %c0_i32_13 = arith.constant 0 : i32
    %c16_i32 = arith.constant 16 : i32
    %13 = arith.muli %c0_i32_13, %c16_i32 : i32
    %14 = tpu.assume_multiple %13, 16 : i32
    %15 = arith.index_cast %14 : i32 to index
    %c0_14 = arith.constant 0 : index
    %16 = vector.load %arg10[%15, %c0_14] : memref<128x128xf32, #tpu.memory_space<vmem>>, vector<16x128xf32>
    %17 = arith.truncf %12 : vector<16x128xf32> to vector<16x128xbf16>
    %cst_15 = arith.constant dense<0.000000e+00> : vector<16x128xf32>
    %18 = tpu.matmul %17, %11, %cst_15 {dimension_numbers = #tpu.dot_dimension_numbers<[1], [0], [0], [1], [0, 0, 1, 1], [], []>} : vector<16x128xbf16>, vector<128x128xbf16>, vector<16x128xf32> -> vector<16x128xf32>
    %19 = arith.addf %16, %18 : vector<16x128xf32>
    %20 = math.tanh %19 : vector<16x128xf32>
    %c1_i32 = arith.constant 1 : i32
    %c16_i32_16 = arith.constant 16 : i32
    %21 = arith.muli %c1_i32, %c16_i32_16 : i32
    %22 = tpu.assume_multiple %21, 16 : i32
    %23 = arith.index_cast %22 : i32 to index
    %c0_17 = arith.constant 0 : index
    %24 = vector.load %arg10[%23, %c0_17] : memref<128x128xf32, #tpu.memory_space<vmem>>, vector<16x128xf32>
    %25 = arith.truncf %20 : vector<16x128xf32> to vector<16x128xbf16>
    %cst_18 = arith.constant dense<0.000000e+00> : vector<16x128xf32>
    %26 = tpu.matmul %25, %11, %cst_18 {dimension_numbers = #tpu.dot_dimension_numbers<[1], [0], [0], [1], [0, 0, 1, 1], [], []>} : vector<16x128xbf16>, vector<128x128xbf16>, vector<16x128xf32> -> vector<16x128xf32>
    %27 = arith.addf %24, %26 : vector<16x128xf32>
    %28 = math.tanh %27 : vector<16x128xf32>
    %c2_i32 = arith.constant 2 : i32
    %c16_i32_19 = arith.constant 16 : i32
    %29 = arith.muli %c2_i32, %c16_i32_19 : i32
    %30 = tpu.assume_multiple %29, 16 : i32
    %31 = arith.index_cast %30 : i32 to index
    %c0_20 = arith.constant 0 : index
    %32 = vector.load %arg10[%31, %c0_20] : memref<128x128xf32, #tpu.memory_space<vmem>>, vector<16x128xf32>
    %33 = arith.truncf %28 : vector<16x128xf32> to vector<16x128xbf16>
    %cst_21 = arith.constant dense<0.000000e+00> : vector<16x128xf32>
    %34 = tpu.matmul %33, %11, %cst_21 {dimension_numbers = #tpu.dot_dimension_numbers<[1], [0], [0], [1], [0, 0, 1, 1], [], []>} : vector<16x128xbf16>, vector<128x128xbf16>, vector<16x128xf32> -> vector<16x128xf32>
    %35 = arith.addf %32, %34 : vector<16x128xf32>
    %36 = math.tanh %35 : vector<16x128xf32>
    %c3_i32 = arith.constant 3 : i32
    %c16_i32_22 = arith.constant 16 : i32
    %37 = arith.muli %c3_i32, %c16_i32_22 : i32
    %38 = tpu.assume_multiple %37, 16 : i32
    %39 = arith.index_cast %38 : i32 to index
    %c0_23 = arith.constant 0 : index
    %40 = vector.load %arg10[%39, %c0_23] : memref<128x128xf32, #tpu.memory_space<vmem>>, vector<16x128xf32>
    %41 = arith.truncf %36 : vector<16x128xf32> to vector<16x128xbf16>
    %cst_24 = arith.constant dense<0.000000e+00> : vector<16x128xf32>
    %42 = tpu.matmul %41, %11, %cst_24 {dimension_numbers = #tpu.dot_dimension_numbers<[1], [0], [0], [1], [0, 0, 1, 1], [], []>} : vector<16x128xbf16>, vector<128x128xbf16>, vector<16x128xf32> -> vector<16x128xf32>
    %43 = arith.addf %40, %42 : vector<16x128xf32>
    %44 = math.tanh %43 : vector<16x128xf32>
    %c4_i32 = arith.constant 4 : i32
    %c16_i32_25 = arith.constant 16 : i32
    %45 = arith.muli %c4_i32, %c16_i32_25 : i32
    %46 = tpu.assume_multiple %45, 16 : i32
    %47 = arith.index_cast %46 : i32 to index
    %c0_26 = arith.constant 0 : index
    %48 = vector.load %arg10[%47, %c0_26] : memref<128x128xf32, #tpu.memory_space<vmem>>, vector<16x128xf32>
    %49 = arith.truncf %44 : vector<16x128xf32> to vector<16x128xbf16>
    %cst_27 = arith.constant dense<0.000000e+00> : vector<16x128xf32>
    %50 = tpu.matmul %49, %11, %cst_27 {dimension_numbers = #tpu.dot_dimension_numbers<[1], [0], [0], [1], [0, 0, 1, 1], [], []>} : vector<16x128xbf16>, vector<128x128xbf16>, vector<16x128xf32> -> vector<16x128xf32>
    %51 = arith.addf %48, %50 : vector<16x128xf32>
    %52 = math.tanh %51 : vector<16x128xf32>
    %c5_i32 = arith.constant 5 : i32
    %c16_i32_28 = arith.constant 16 : i32
    %53 = arith.muli %c5_i32, %c16_i32_28 : i32
    %54 = tpu.assume_multiple %53, 16 : i32
    %55 = arith.index_cast %54 : i32 to index
    %c0_29 = arith.constant 0 : index
    %56 = vector.load %arg10[%55, %c0_29] : memref<128x128xf32, #tpu.memory_space<vmem>>, vector<16x128xf32>
    %57 = arith.truncf %52 : vector<16x128xf32> to vector<16x128xbf16>
    %cst_30 = arith.constant dense<0.000000e+00> : vector<16x128xf32>
    %58 = tpu.matmul %57, %11, %cst_30 {dimension_numbers = #tpu.dot_dimension_numbers<[1], [0], [0], [1], [0, 0, 1, 1], [], []>} : vector<16x128xbf16>, vector<128x128xbf16>, vector<16x128xf32> -> vector<16x128xf32>
    %59 = arith.addf %56, %58 : vector<16x128xf32>
    %60 = math.tanh %59 : vector<16x128xf32>
    %c6_i32 = arith.constant 6 : i32
    %c16_i32_31 = arith.constant 16 : i32
    %61 = arith.muli %c6_i32, %c16_i32_31 : i32
    %62 = tpu.assume_multiple %61, 16 : i32
    %63 = arith.index_cast %62 : i32 to index
    %c0_32 = arith.constant 0 : index
    %64 = vector.load %arg10[%63, %c0_32] : memref<128x128xf32, #tpu.memory_space<vmem>>, vector<16x128xf32>
    %65 = arith.truncf %60 : vector<16x128xf32> to vector<16x128xbf16>
    %cst_33 = arith.constant dense<0.000000e+00> : vector<16x128xf32>
    %66 = tpu.matmul %65, %11, %cst_33 {dimension_numbers = #tpu.dot_dimension_numbers<[1], [0], [0], [1], [0, 0, 1, 1], [], []>} : vector<16x128xbf16>, vector<128x128xbf16>, vector<16x128xf32> -> vector<16x128xf32>
    %67 = arith.addf %64, %66 : vector<16x128xf32>
    %68 = math.tanh %67 : vector<16x128xf32>
    %c7_i32 = arith.constant 7 : i32
    %c16_i32_34 = arith.constant 16 : i32
    %69 = arith.muli %c7_i32, %c16_i32_34 : i32
    %70 = tpu.assume_multiple %69, 16 : i32
    %71 = arith.index_cast %70 : i32 to index
    %c0_35 = arith.constant 0 : index
    %72 = vector.load %arg10[%71, %c0_35] : memref<128x128xf32, #tpu.memory_space<vmem>>, vector<16x128xf32>
    %73 = arith.truncf %68 : vector<16x128xf32> to vector<16x128xbf16>
    %cst_36 = arith.constant dense<0.000000e+00> : vector<16x128xf32>
    %74 = tpu.matmul %73, %11, %cst_36 {dimension_numbers = #tpu.dot_dimension_numbers<[1], [0], [0], [1], [0, 0, 1, 1], [], []>} : vector<16x128xbf16>, vector<128x128xbf16>, vector<16x128xf32> -> vector<16x128xf32>
    %75 = arith.addf %72, %74 : vector<16x128xf32>
    %76 = math.tanh %75 : vector<16x128xf32>
    %c8_i32 = arith.constant 8 : i32
    %c0_37 = arith.constant 0 : index
    %c0_38 = arith.constant 0 : index
    %77 = vector.load %arg9[%c0_37, %c0_38] : memref<16x128xf32, #tpu.memory_space<vmem>>, vector<16x128xf32>
    tpu.vector_store %arg9[%c0_37, %c0_38], %76 {strides = array<i32>} : memref<16x128xf32, #tpu.memory_space<vmem>>, vector<16x128xf32>,
    %c0_i32_39 = arith.constant 0 : i32
    %78 = arith.cmpi eq, %arg1, %c0_i32_39 : i32
    %79 = arith.extui %78 : i1 to i32
    %c0_i32_40 = arith.constant 0 : i32
    %80 = arith.cmpi ne, %79, %c0_i32_40 : i32
    scf.if %80 {
      %81 = arith.truncf %76 : vector<16x128xf32> to vector<16x128xbf16>
      %c0_41 = arith.constant 0 : index
      %c0_42 = arith.constant 0 : index
      %82 = vector.load %arg6[%c0_41, %c0_42] : memref<128x128xbf16, #tpu.memory_space<vmem>>, vector<128x128xbf16>
      %cst_43 = arith.constant dense<0.000000e+00> : vector<16x128xf32>
      %83 = tpu.matmul %81, %82, %cst_43 {dimension_numbers = #tpu.dot_dimension_numbers<[1], [0], [0], [1], [0, 0, 1, 1], [], []>} : vector<16x128xbf16>, vector<128x128xbf16>, vector<16x128xf32> -> vector<16x128xf32>
      %c0_44 = arith.constant 0 : index
      %c0_45 = arith.constant 0 : index
      %84 = vector.load %arg7[%c0_44, %c0_45] : memref<1x128xf32, #tpu.memory_space<vmem>>, vector<1x128xf32>
      %85 = vector.broadcast %84 : vector<1x128xf32> to vector<16x128xf32>
      %86 = arith.addf %83, %85 : vector<16x128xf32>
      %c0_46 = arith.constant 0 : index
      %c0_47 = arith.constant 0 : index
      %87 = vector.load %arg8[%c0_46, %c0_47] : memref<16x128xf32, #tpu.memory_space<vmem>>, vector<16x128xf32>
      tpu.vector_store %arg8[%c0_46, %c0_47], %86 {strides = array<i32>} : memref<16x128xf32, #tpu.memory_space<vmem>>, vector<16x128xf32>,
    } else {
    }
    return
  }
  func.func @transform_0(%arg0: i32, %arg1: i32) -> (i32, i32, i32) {
    %c0_i32 = arith.constant 0 : i32
    %c0_i32_0 = arith.constant 0 : i32
    return %arg0, %arg1, %c0_i32 : i32, i32, i32
  }
  func.func @transform_1(%arg0: i32, %arg1: i32) -> (i32, i32) {
    %c0_i32 = arith.constant 0 : i32
    %c0_i32_0 = arith.constant 0 : i32
    %c0_i32_1 = arith.constant 0 : i32
    return %c0_i32, %c0_i32_0 : i32, i32
  }
  func.func @transform_2(%arg0: i32, %arg1: i32) -> (i32, i32) {
    %c0_i32 = arith.constant 0 : i32
    %c0_i32_0 = arith.constant 0 : i32
    %c0_i32_1 = arith.constant 0 : i32
    return %c0_i32, %c0_i32_0 : i32, i32
  }
  func.func @transform_3(%arg0: i32, %arg1: i32) -> (i32, i32) {
    %c0_i32 = arith.constant 0 : i32
    %c0_i32_0 = arith.constant 0 : i32
    %c0_i32_1 = arith.constant 0 : i32
    return %c0_i32, %c0_i32_0 : i32, i32
  }
  func.func @transform_4(%arg0: i32, %arg1: i32) -> (i32, i32) {
    %c0_i32 = arith.constant 0 : i32
    %c0_i32_0 = arith.constant 0 : i32
    %c0_i32_1 = arith.constant 0 : i32
    return %c0_i32, %c0_i32_0 : i32, i32
  }
  func.func @transform_5(%arg0: i32, %arg1: i32) -> (i32, i32) {
    %c0_i32 = arith.constant 0 : i32
    %c0_i32_0 = arith.constant 0 : i32
    %c0_i32_1 = arith.constant 0 : i32
    return %c0_i32, %c0_i32_0 : i32, i32
  }
  func.func @transform_6(%arg0: i32, %arg1: i32) -> (i32, i32) {
    %c0_i32 = arith.constant 0 : i32
    %c0_i32_0 = arith.constant 0 : i32
    return %arg0, %c0_i32 : i32, i32
  }
}

</mosaic_0001>

<bundles_post_ra>
// kernel: tpu_custom_call.1
= control target key start
LH: loop header
LB: loop body
LE: loop exit
PB: predicated region body
PF: predicated region fallthrough
CT: control target
= control target key end

     0   :  { %11 = vsyncpa [#allocation5], 0  ;;  %s1755_s0 = inlined_call_operand.hbm [shape: bf16[1,128,128], index: 0, kind: input, shape index: {}]   ;;  %s1756_s1 = inlined_call_operand.hbm [shape: bf16[128,128], index: 1, kind: input, shape index: {}]   ;;  %s1757_s2 = inlined_call_operand.hbm [shape: bf16[128,128], index: 2, kind: input, shape index: {}]   ;;  %s1758_s3 = inlined_call_operand.vmem [shape: f32[1,128], index: 3, kind: input, shape index: {}]   ;;  %s1759_s4 = inlined_call_operand.hbm [shape: bf16[128,128], index: 4, kind: input, shape index: {}]   ;;  %s1760_s5 = inlined_call_operand.vmem [shape: f32[1,128], index: 5, kind: input, shape index: {}]   ;;  %s1761_s6 = inlined_call_operand.hbm [shape: f32[16,128], index: 6, kind: output, shape index: {}]  }
   0x1   :  { %12 = vsyncpa [#allocation8], 0 }
   0x2   :  { %13 = vsyncpa [#allocation11], 0 }
   0x3   :  { %14 = vsyncpa [#allocation6], 0  ;;  %s1457_s21 = smov [#allocation7]   ;;  %s1458_s23 = smov [#allocation4]  }
   0x4   :  { %s32_s22 = sshll.u32 %s1457_s21, 4  ;;  %s20_s24 = sshll.u32 %s1458_s23, 4  ;;  %s33_s22 = int_to_ptr.vmem [resolvable:$true] %s32_s22  ;;  %s21_s24 = int_to_ptr.vmem [resolvable:$true] %s20_s24 }
   0x5   :  { %s1357_s25 = scalar_lea.vmem %s33_s22, 1024  ;;  %p1362_p1 = scmp.lt.s32.totalorder %s33_s22, %s33_s22 }
   0x6   :  { %p1358_p0 = scmp.ne.s32.totalorder %s33_s22, %s1357_s25  ;;  %p1363_p2 = scmp.lt.s32.totalorder %s1357_s25, %s1357_s25 }
   0x8   :  { %p1364_p3 = por %p1363_p2, %p1362_p1 }
   0xa   :  { %p1365_p4 = pnand %p1364_p3, %p1358_p0 }
   0xc   :  { %1368 = shalt.err (!%p1365_p4)
}
   0xd   :  { %s1459_s26 = smov 64   ;;  %s1460_s27 = smov 4  }
   0xe   :  { %38 = dma.hbm_to_vmem [thread:$0]  %s1756_s1, 1024, %s33_s22, [#allocation8], %s1459_s26, %s1459_s26, %s1460_s27  }
   0xf   :  { %s1377_s30 = scalar_lea.vmem %s21_s24, 1024  ;;  %p1382_p6 = scmp.lt.s32.totalorder %s21_s24, %s21_s24 }
  0x10   :  { %p1378_p5 = scmp.ne.s32.totalorder %s21_s24, %s1377_s30  ;;  %p1383_p7 = scmp.lt.s32.totalorder %s1377_s30, %s1377_s30 }
  0x12   :  { %p1384_p8 = por %p1383_p7, %p1382_p6 }
  0x14   :  { %p1385_p9 = pnand %p1384_p8, %p1378_p5 }
  0x16   :  { %1388 = shalt.err (!%p1385_p9)
}
  0x17   :  { %26 = dma.hbm_to_vmem [thread:$0]  %s1755_s0, 1024, %s21_s24, [#allocation5], %s1459_s26, %s1459_s26, %s1460_s27  }
  0x18   :  { %s1461_s9 = smov [#allocation9]   ;;  %s1462_s11 = smov [#allocation10]  }
  0x19   :  { %s44_s10 = sshll.u32 %s1461_s9, 4  ;;  %s58_s12 = sshll.u32 %s1462_s11, 4  ;;  %s45_s10 = int_to_ptr.vmem [resolvable:$true] %s44_s10  ;;  %s59_s12 = int_to_ptr.vmem [resolvable:$true] %s58_s12 }
  0x1a   :  { %s1397_s1 = scalar_lea.vmem %s45_s10, 1024  ;;  %p1402_p11 = scmp.lt.s32.totalorder %s45_s10, %s45_s10 }
  0x1b   :  { %p1398_p10 = scmp.ne.s32.totalorder %s45_s10, %s1397_s1  ;;  %p1403_p12 = scmp.lt.s32.totalorder %s1397_s1, %s1397_s1 }
  0x1d   :  { %p1404_p13 = por %p1403_p12, %p1402_p11 }
  0x1f   :  { %p1405_p0 = pnand %p1404_p13, %p1398_p10 }
  0x21   :  { %1408 = shalt.err (!%p1405_p0)
}
  0x22   :  { %50 = dma.hbm_to_vmem [thread:$0]  %s1757_s2, 1024, %s45_s10, [#allocation8], %s1459_s26, %s1459_s26, %s1460_s27  }
  0x23   :  { %s1417_s0 = scalar_lea.vmem %s59_s12, 1024  ;;  %p1422_p2 = scmp.lt.s32.totalorder %s59_s12, %s59_s12 }
  0x24   :  { %p1418_p1 = scmp.ne.s32.totalorder %s59_s12, %s1417_s0  ;;  %p1423_p3 = scmp.lt.s32.totalorder %s1417_s0, %s1417_s0 }
  0x26   :  { %p1424_p4 = por %p1423_p3, %p1422_p2 }
  0x28   :  { %p1425_p5 = pnand %p1424_p4, %p1418_p1 }
  0x2a   :  { %1428 = shalt.err (!%p1425_p5)
}
  0x2b   :  { %64 = dma.hbm_to_vmem [thread:$0]  %s1759_s4, 1024, %s59_s12, [#allocation11], %s1459_s26, %s1459_s26, %s1460_s27  }
  0x2c   :  { %1449 = dma.done.wait [#allocation5], 1024  }
  0x2d   :  { %1450 = vsyncadd [#allocation5], 4294966272 }
  0x2e   :  { %1451 = dma.done.wait [#allocation8], 2048  }
  0x2f   :  { %1452 = vsyncadd [#allocation8], 4294965248 }
  0x30   :  { %1453 = dma.done.wait [#allocation11], 1024  }
  0x31   :  { %1454 = vsyncadd [#allocation11], 4294966272  ;;  %v1463_v0 = vmov 0.0   ;;  %vm1464_vm0 = vmmov 0   ;;  %v1285_v1 = vld [vmem:[#allocation7 + $0x38] sm:$0xff]   ;;  %v1287_v3 = vld [vmem:[#allocation7 + $0x30] sm:$0xff]  }
  0x32   :  { %1093 = vmatprep.subr.bf16.mxu1 %v1463_v0  ;;  %1109 = vmatprep.mubr.msk.bf16.mxu1 %vm1464_vm0, %v1463_v0  ;;  %v1531_v2 = vld [vmem:[#allocation9 + $0x38] sm:$0xff]   ;;  %v1534_v4 = vld [vmem:[#allocation9 + $0x30] sm:$0xff]   ;;  %v1289_v5 = vld [vmem:[#allocation7 + $0x28] sm:$0xff]   ;;  %v1465_v20 = vmov 0.0|0.0   ;;  %s1466_s18 = smov [#allocation12]  }
  0x33   :  { %1061 = vmatprep.subr.bf16.mxu0 %v1285_v1  ;;  %1094 = vmatpush3.bf16.msra.mxu1 %v1531_v2  ;;  %v1538_v6 = vld [vmem:[#allocation9 + $0x28] sm:$0xff]   ;;  %v1291_v7 = vld [vmem:[#allocation7 + $0x20] sm:$0xff]   ;;  %v1293_v9 = vld [vmem:[#allocation7 + $0x18] sm:$0xff]   ;;  %s916_s19 = sshll.u32 %s1466_s18, 4  ;;  %s917_s19 = int_to_ptr.vmem [resolvable:$true] %s916_s19 }
  0x34   :  { %1062 = vmatpush3.bf16.msra.mxu0 %v1285_v1  ;;  %1095 = vmatprep.subr.bf16.mxu1 %v1463_v0  ;;  %v1542_v8 = vld [vmem:[#allocation9 + $0x20] sm:$0xff]   ;;  %v1545_v10 = vld [vmem:[#allocation9 + $0x18] sm:$0xff]   ;;  %v1295_v11 = vld [vmem:[#allocation7 + $0x10] sm:$0xff]   ;;  %s1429_s20 = scalar_lea.vmem %s917_s19, 256  ;;  %p1434_p7 = scmp.lt.s32.totalorder %s917_s19, %s917_s19 }
  0x35   :  { %1063 = vmatprep.subr.bf16.mxu0 %v1287_v3  ;;  %v1301_v12 = vld [vmem:[#allocation4] sm:$0xff]   ;;  %v1549_v13 = vld [vmem:[#allocation9 + $0x10] sm:$0xff]   ;;  %v1297_v14 = vld [vmem:[#allocation7 + $0x8] sm:$0xff]   ;;  %p1430_p6 = scmp.ne.s32.totalorder %s917_s19, %s1429_s20  ;;  %p1435_p8 = scmp.lt.s32.totalorder %s1429_s20, %s1429_s20 }
  0x36   :  { %1077 = vmatprep.mubr.bf16.mxu0 %v1301_v12  ;;  %v1553_v15 = vld [vmem:[#allocation9 + $0x8] sm:$0xff]   ;;  %v1299_v16 = vld [vmem:[#allocation7] sm:$0xff]   ;;  %v1303_v19 = vld [vmem:[#allocation4 + $0x10] sm:$0xff]  }
  0x37   :  { %1096 = vmatpush3.bf16.msra.mxu1 %v1534_v4  ;;  %v1557_v17 = vld [vmem:[#allocation9] sm:$0xff]   ;;  %v1302_v18 = vld [vmem:[#allocation4 + $0x8] sm:$0xff]   ;;  %v1304_v21 = vld [vmem:[#allocation4 + $0x18] sm:$0xff]   ;;  %p1436_p9 = por %p1435_p8, %p1434_p7 }
  0x38   :  { %1064 = vmatpush3.bf16.msra.mxu0 %v1287_v3  ;;  %1097 = vmatprep.subr.bf16.mxu1 %v1463_v0  ;;  %v1305_v22 = vld [vmem:[#allocation4 + $0x20] sm:$0xff]   ;;  %v1306_v23 = vld [vmem:[#allocation4 + $0x28] sm:$0xff]   ;;  %v1307_v24 = vld [vmem:[#allocation4 + $0x30] sm:$0xff]  }
  0x39   :  { %1065 = vmatprep.subr.bf16.mxu0 %v1289_v5  ;;  %v1308_v25 = vld [vmem:[#allocation4 + $0x38] sm:$0xff]   ;;  %v1603_v28 = vld [vmem:[%s1758_s3] ss:$0 sm:$0xff]  ;;  %p1437_p10 = pnand %p1436_p9, %p1430_p6 }
  0x3b   :  { %1098 = vmatpush3.bf16.msra.mxu1 %v1538_v6 }
  0x3c   :  { %1066 = vmatpush3.bf16.msra.mxu0 %v1289_v5  ;;  %1099 = vmatprep.subr.bf16.mxu1 %v1463_v0 }
  0x3d   :  { %1067 = vmatprep.subr.bf16.mxu0 %v1291_v7 }
  0x3f   :  { %1100 = vmatpush3.bf16.msra.mxu1 %v1542_v8 }
  0x40   :  { %1068 = vmatpush3.bf16.msra.mxu0 %v1291_v7  ;;  %1101 = vmatprep.subr.bf16.mxu1 %v1463_v0 }
  0x41   :  { %1069 = vmatprep.subr.bf16.mxu0 %v1293_v9 }
  0x43   :  { %1102 = vmatpush3.bf16.msra.mxu1 %v1545_v10 }
  0x44   :  { %1070 = vmatpush3.bf16.msra.mxu0 %v1293_v9  ;;  %1103 = vmatprep.subr.bf16.mxu1 %v1463_v0 }
  0x45   :  { %1071 = vmatprep.subr.bf16.mxu0 %v1295_v11 }
  0x47   :  { %1104 = vmatpush3.bf16.msra.mxu1 %v1549_v13 }
  0x48   :  { %1072 = vmatpush3.bf16.msra.mxu0 %v1295_v11  ;;  %1105 = vmatprep.subr.bf16.mxu1 %v1463_v0 }
  0x49   :  { %1073 = vmatprep.subr.bf16.mxu0 %v1297_v14 }
  0x4b   :  { %1106 = vmatpush3.bf16.msra.mxu1 %v1553_v15 }
  0x4c   :  { %1074 = vmatpush3.bf16.msra.mxu0 %v1297_v14  ;;  %1107 = vmatprep.subr.bf16.mxu1 %v1463_v0 }
  0x4d   :  { %1075 = vmatprep.subr.bf16.mxu0 %v1299_v16 }
  0x4f   :  { %1108 = vmatpush3.bf16.msra.mxu1 %v1557_v17 }
  0x50   :  { %1076 = vmatpush3.bf16.msra.mxu0 %v1299_v16  ;;  %1133 = vmatprep.subr.bf16.mxu1 %v1463_v0 }
  0x51   :  { %1113 = vmatprep.subr.bf16.mxu0 %v1463_v0 }
  0x52   :  { %1110 = vmatmul.mubr.bf16.vlgmr.msra.gmra.mxu1 %v1465_v20 }
  0x53   :  { %1078 = vmatmul.mubr.bf16.vlgmr.msra.gmra.mxu0 %v1302_v18  ;;  %1134 = vmatpush3.bf16.msra.mxu1 %v1531_v2 }
  0x54   :  { %1114 = vmatpush3.bf16.msra.mxu0 %v1531_v2  ;;  %1081 = vmatprep.mubr.bf16.mxu0 %v1303_v19 }
  0x55   :  { %1115 = vmatprep.subr.bf16.mxu0 %v1463_v0  ;;  %1135 = vmatprep.subr.bf16.mxu1 %v1463_v0 }
  0x56   :  { %1149 = vmatprep.mubr.msk.bf16.mxu1 %vm1464_vm0, %v1463_v0 }
  0x57   :  { %1136 = vmatpush3.bf16.msra.mxu1 %v1534_v4 }
  0x58   :  { %1116 = vmatpush3.bf16.msra.mxu0 %v1534_v4  ;;  %1137 = vmatprep.subr.bf16.mxu1 %v1463_v0 }
  0x59   :  { %1117 = vmatprep.subr.bf16.mxu0 %v1463_v0 }
  0x5b   :  { %1082 = vmatmul.mubr.bf16.gmra.mxu0 %v1304_v21  ;;  %1138 = vmatpush3.bf16.msra.mxu1 %v1538_v6 }
  0x5c   :  { %1118 = vmatpush3.bf16.msra.mxu0 %v1538_v6  ;;  %1139 = vmatprep.subr.bf16.mxu1 %v1463_v0 }
  0x5d   :  { %1119 = vmatprep.subr.bf16.mxu0 %v1463_v0  ;;  %1085 = vmatprep.mubr.bf16.mxu0 %v1305_v22 }
  0x5f   :  { %1140 = vmatpush3.bf16.msra.mxu1 %v1542_v8 }
  0x60   :  { %1120 = vmatpush3.bf16.msra.mxu0 %v1542_v8  ;;  %1141 = vmatprep.subr.bf16.mxu1 %v1463_v0 }
  0x61   :  { %1121 = vmatprep.subr.bf16.mxu0 %v1463_v0 }
  0x63   :  { %1142 = vmatpush3.bf16.msra.mxu1 %v1545_v10  ;;  %1086 = vmatmul.mubr.bf16.gmra.mxu0 %v1306_v23 }
  0x64   :  { %1122 = vmatpush3.bf16.msra.mxu0 %v1545_v10  ;;  %1143 = vmatprep.subr.bf16.mxu1 %v1463_v0 }
  0x65   :  { %1123 = vmatprep.subr.bf16.mxu0 %v1463_v0  ;;  %1089 = vmatprep.mubr.bf16.mxu0 %v1307_v24 }
  0x67   :  { %1144 = vmatpush3.bf16.msra.mxu1 %v1549_v13 }
  0x68   :  { %1124 = vmatpush3.bf16.msra.mxu0 %v1549_v13  ;;  %1145 = vmatprep.subr.bf16.mxu1 %v1463_v0 }
  0x69   :  { %1125 = vmatprep.subr.bf16.mxu0 %v1463_v0 }
  0x6b   :  { %1146 = vmatpush3.bf16.msra.mxu1 %v1553_v15  ;;  %1090 = vmatmul.mubr.bf16.gmra.mxu0 %v1308_v25 }
  0x6c   :  { %1126 = vmatpush3.bf16.msra.mxu0 %v1553_v15  ;;  %1147 = vmatprep.subr.bf16.mxu1 %v1463_v0 }
  0x6d   :  { %1127 = vmatprep.subr.bf16.mxu0 %v1463_v0  ;;  %1129 = vmatprep.mubr.msk.bf16.mxu0 %vm1464_vm0, %v1463_v0 }
  0x6f   :  { %1148 = vmatpush3.bf16.msra.mxu1 %v1557_v17 }
  0x70   :  { %1128 = vmatpush3.bf16.msra.mxu0 %v1557_v17  ;;  %1173 = vmatprep.subr.bf16.mxu1 %v1463_v0 }
  0x71   :  { %1153 = vmatprep.subr.bf16.mxu0 %v1463_v0 }
 0x112   :  { %v437_v26 = vpop.f32.mrf.mxu1 }
 0x113   :  { %v1079_v27 = vpop.f32.mrf.mxu0 }
 0x114   :  { %v1111_v29 = vpop.f32.mrf.mxu1  ;;  %v264_v54 = vadd.f32 %v1079_v27, %v1603_v28 }
 0x115   :  { %v255_v30 = vpop.f32.mrf.mxu0 }
 0x116   :  { %v256_v31 = vadd.f32 %v1603_v28, %v255_v30  ;;  %v440_v32 = vpop.f32.mrf.mxu1 }
 0x117   :  { %v1080_v33 = vpop.f32.mrf.mxu0 }
 0x118   :  { %v444_v34 = vadd.f32 %v437_v26, %v256_v31  ;;  %v1112_v35 = vpop.f32.mrf.mxu1  ;;  %v267_v58 = vadd.f32 %v1080_v33, %v1603_v28 }
 0x119   :  { %v258_v36 = vpop.f32.mrf.mxu0 }
 0x11a   :  { %v259_v37 = vadd.f32 %v1603_v28, %v258_v36  ;;  %1317 = vtanh.f32 %v444_v34 }
 0x11b   :  { %v1625_v42 = vpop.f32.mrf.mxu0 }
 0x11c   :  { %v445_v38 = vadd.f32 %v440_v32, %v259_v37  ;;  %v280_v21 = vadd.f32 %v1625_v42, %v1603_v28 }
 0x11d   :  { %v271_v43 = vpop.f32.mrf.mxu0 }
 0x11e   :  { %1319 = vtanh.f32 %v445_v38  ;;  %v272_v3 = vadd.f32 %v1603_v28, %v271_v43 }
 0x11f   :  { %v1627_v44 = vpop.f32.mrf.mxu0 }
 0x120   :  { %v283_v25 = vadd.f32 %v1627_v44, %v1603_v28 }
 0x121   :  { %v274_v45 = vpop.f32.mrf.mxu0 }
 0x122   :  { %v275_v11 = vadd.f32 %v1603_v28, %v274_v45 }
 0x123   :  { %v1629_v46 = vpop.f32.mrf.mxu0 }
 0x125   :  { %v1631_v47 = vpop.f32.mrf.mxu0 }
 0x126   :  { %v288_v33 = vadd.f32 %v1603_v28, %v1631_v47 }
 0x127   :  { %v1318_v39 = vpop.eup %1317  ;;  %v1633_v48 = vpop.f32.mrf.mxu0 }
 0x129   :  { %v1635_v49 = vpop.f32.mrf.mxu0 }
 0x12a   :  { %v291_v37 = vadd.f32 %v1603_v28, %v1635_v49 }
 0x12b   :  { %v1320_v40 = vpop.eup %1319  ;;  %v1637_v50 = vpop.f32.mrf.mxu0 }
 0x12c   :  { %v451_v41 = vpack.c.bf16 %v1320_v40, %v1318_v39 }
 0x12d   :  { %v1639_v51 = vpop.f32.mrf.mxu0 }
 0x12e   :  { %1130 = vmatmul.mubr.bf16.vlgmr.msra.gmra.mxu0 %v451_v41 }
 0x12f   :  { %1154 = vmatpush3.bf16.msra.mxu0 %v1531_v2  ;;  %1169 = vmatprep.mubr.msk.bf16.mxu0 %vm1464_vm0, %v1463_v0  ;;  %v1641_v52 = vpop.f32.mrf.mxu0 }
 0x130   :  { %1155 = vmatprep.subr.bf16.mxu0 %v1463_v0 }
 0x131   :  { %v1643_v53 = vpop.f32.mrf.mxu0 }
 0x133   :  { %1156 = vmatpush3.bf16.msra.mxu0 %v1534_v4 }
 0x134   :  { %1157 = vmatprep.subr.bf16.mxu0 %v1463_v0 }
 0x137   :  { %1158 = vmatpush3.bf16.msra.mxu0 %v1538_v6 }
 0x138   :  { %1159 = vmatprep.subr.bf16.mxu0 %v1463_v0 }
 0x13b   :  { %1160 = vmatpush3.bf16.msra.mxu0 %v1542_v8 }
 0x13c   :  { %1161 = vmatprep.subr.bf16.mxu0 %v1463_v0 }
 0x13f   :  { %1162 = vmatpush3.bf16.msra.mxu0 %v1545_v10 }
 0x140   :  { %1163 = vmatprep.subr.bf16.mxu0 %v1463_v0 }
 0x143   :  { %1164 = vmatpush3.bf16.msra.mxu0 %v1549_v13 }
 0x144   :  { %1165 = vmatprep.subr.bf16.mxu0 %v1463_v0 }
 0x147   :  { %1166 = vmatpush3.bf16.msra.mxu0 %v1553_v15 }
 0x148   :  { %1167 = vmatprep.subr.bf16.mxu0 %v1463_v0 }
 0x14b   :  { %1168 = vmatpush3.bf16.msra.mxu0 %v1557_v17 }
 0x14c   :  { %1193 = vmatprep.subr.bf16.mxu0 %v1463_v0 }
 0x1ee   :  { %v486_v55 = vpop.f32.mrf.mxu0 }
 0x1ef   :  { %v493_v56 = vadd.f32 %v486_v55, %v264_v54 }
 0x1f0   :  { %v1131_v57 = vpop.f32.mrf.mxu0 }
 0x1f1   :  { %1321 = vtanh.f32 %v493_v56  ;;  %v307_v57 = vadd.f32 %v1603_v28, %v1643_v53  ;;  %v1314_v53 = vld [vmem:[#allocation10 + $0x10] sm:$0xff]  }
 0x1f2   :  { %v489_v59 = vpop.f32.mrf.mxu0 }
 0x1f3   :  { %v494_v60 = vadd.f32 %v489_v59, %v267_v58 }
 0x1f4   :  { %v1132_v61 = vpop.f32.mrf.mxu0 }
 0x1f5   :  { %1323 = vtanh.f32 %v494_v60 }
 0x1fe   :  { %v1322_v62 = vpop.eup %1321 }
 0x202   :  { %v1324_v63 = vpop.eup %1323 }
 0x203   :  { %v500_v1 = vpack.c.bf16 %v1324_v63, %v1322_v62 }
 0x205   :  { %1150 = vmatmul.mubr.bf16.vlgmr.msra.gmra.mxu1 %v500_v1  ;;  %v1311_v1 = vld [vmem:[#allocation10 + $0x28] sm:$0xff]  }
 0x206   :  { %1174 = vmatpush3.bf16.msra.mxu1 %v1531_v2  ;;  %1189 = vmatprep.mubr.msk.bf16.mxu1 %vm1464_vm0, %v1463_v0 }
 0x207   :  { %1175 = vmatprep.subr.bf16.mxu1 %v1463_v0 }
 0x20a   :  { %1176 = vmatpush3.bf16.msra.mxu1 %v1534_v4 }
 0x20b   :  { %1177 = vmatprep.subr.bf16.mxu1 %v1463_v0 }
 0x20e   :  { %1178 = vmatpush3.bf16.msra.mxu1 %v1538_v6 }
 0x20f   :  { %1179 = vmatprep.subr.bf16.mxu1 %v1463_v0 }
 0x212   :  { %1180 = vmatpush3.bf16.msra.mxu1 %v1542_v8 }
 0x213   :  { %1181 = vmatprep.subr.bf16.mxu1 %v1463_v0 }
 0x216   :  { %1182 = vmatpush3.bf16.msra.mxu1 %v1545_v10 }
 0x217   :  { %1183 = vmatprep.subr.bf16.mxu1 %v1463_v0 }
 0x21a   :  { %1184 = vmatpush3.bf16.msra.mxu1 %v1549_v13 }
 0x21b   :  { %1185 = vmatprep.subr.bf16.mxu1 %v1463_v0 }
 0x21e   :  { %1186 = vmatpush3.bf16.msra.mxu1 %v1553_v15 }
 0x21f   :  { %1187 = vmatprep.subr.bf16.mxu1 %v1463_v0 }
 0x222   :  { %1188 = vmatpush3.bf16.msra.mxu1 %v1557_v17 }
 0x223   :  { %1213 = vmatprep.subr.bf16.mxu1 %v1463_v0 }
 0x2c5   :  { %v535_v5 = vpop.f32.mrf.mxu1 }
 0x2c6   :  { %v542_v7 = vadd.f32 %v535_v5, %v272_v3  ;;  %v1313_v3 = vld [vmem:[#allocation10 + $0x18] sm:$0xff]   ;;  %v1315_v5 = vld [vmem:[#allocation10 + $0x8] sm:$0xff]  }
 0x2c7   :  { %v1151_v9 = vpop.f32.mrf.mxu1 }
 0x2c8   :  { %1325 = vtanh.f32 %v542_v7  ;;  %v1316_v7 = vld [vmem:[#allocation10] sm:$0xff]   ;;  %v312_v9 = vadd.f32 %v1637_v50, %v1603_v28 }
 0x2c9   :  { %v538_v12 = vpop.f32.mrf.mxu1 }
 0x2ca   :  { %v543_v14 = vadd.f32 %v538_v12, %v275_v11 }
 0x2cb   :  { %v1152_v16 = vpop.f32.mrf.mxu1 }
 0x2cc   :  { %1327 = vtanh.f32 %v543_v14  ;;  %v315_v16 = vadd.f32 %v1641_v52, %v1603_v28 }
 0x2d5   :  { %v1326_v18 = vpop.eup %1325 }
 0x2d9   :  { %v1328_v19 = vpop.eup %1327 }
 0x2da   :  { %v549_v20 = vpack.c.bf16 %v1328_v19, %v1326_v18 }
 0x2dc   :  { %1170 = vmatmul.mubr.bf16.vlgmr.msra.gmra.mxu0 %v549_v20 }
 0x2dd   :  { %1194 = vmatpush3.bf16.msra.mxu0 %v1531_v2  ;;  %1209 = vmatprep.mubr.msk.bf16.mxu0 %vm1464_vm0, %v1463_v0 }
 0x2de   :  { %1195 = vmatprep.subr.bf16.mxu0 %v1463_v0 }
 0x2e1   :  { %1196 = vmatpush3.bf16.msra.mxu0 %v1534_v4 }
 0x2e2   :  { %1197 = vmatprep.subr.bf16.mxu0 %v1463_v0 }
 0x2e5   :  { %1198 = vmatpush3.bf16.msra.mxu0 %v1538_v6 }
 0x2e6   :  { %1199 = vmatprep.subr.bf16.mxu0 %v1463_v0 }
 0x2e9   :  { %1200 = vmatpush3.bf16.msra.mxu0 %v1542_v8 }
 0x2ea   :  { %1201 = vmatprep.subr.bf16.mxu0 %v1463_v0 }
 0x2ed   :  { %1202 = vmatpush3.bf16.msra.mxu0 %v1545_v10 }
 0x2ee   :  { %1203 = vmatprep.subr.bf16.mxu0 %v1463_v0 }
 0x2f1   :  { %1204 = vmatpush3.bf16.msra.mxu0 %v1549_v13 }
 0x2f2   :  { %1205 = vmatprep.subr.bf16.mxu0 %v1463_v0 }
 0x2f5   :  { %1206 = vmatpush3.bf16.msra.mxu0 %v1553_v15 }
 0x2f6   :  { %1207 = vmatprep.subr.bf16.mxu0 %v1463_v0 }
 0x2f9   :  { %1208 = vmatpush3.bf16.msra.mxu0 %v1557_v17 }
 0x2fa   :  { %1233 = vmatprep.subr.bf16.mxu0 %v1463_v0 }
 0x39c   :  { %v584_v22 = vpop.f32.mrf.mxu0 }
 0x39d   :  { %v591_v23 = vadd.f32 %v584_v22, %v280_v21 }
 0x39e   :  { %v1171_v24 = vpop.f32.mrf.mxu0 }
 0x39f   :  { %1329 = vtanh.f32 %v591_v23 }
 0x3a0   :  { %v587_v26 = vpop.f32.mrf.mxu0 }
 0x3a1   :  { %v592_v27 = vadd.f32 %v587_v26, %v283_v25 }
 0x3a2   :  { %v1172_v29 = vpop.f32.mrf.mxu0 }
 0x3a3   :  { %1331 = vtanh.f32 %v592_v27 }
 0x3ac   :  { %v1330_v30 = vpop.eup %1329 }
 0x3b0   :  { %v1332_v31 = vpop.eup %1331 }
 0x3b1   :  { %v598_v32 = vpack.c.bf16 %v1332_v31, %v1330_v30 }
 0x3b3   :  { %1190 = vmatmul.mubr.bf16.vlgmr.msra.gmra.mxu1 %v598_v32 }
 0x3b4   :  { %1214 = vmatpush3.bf16.msra.mxu1 %v1531_v2  ;;  %1229 = vmatprep.mubr.msk.bf16.mxu1 %vm1464_vm0, %v1463_v0 }
 0x3b5   :  { %1215 = vmatprep.subr.bf16.mxu1 %v1463_v0 }
 0x3b8   :  { %1216 = vmatpush3.bf16.msra.mxu1 %v1534_v4 }
 0x3b9   :  { %1217 = vmatprep.subr.bf16.mxu1 %v1463_v0 }
 0x3bc   :  { %1218 = vmatpush3.bf16.msra.mxu1 %v1538_v6 }
 0x3bd   :  { %1219 = vmatprep.subr.bf16.mxu1 %v1463_v0 }
 0x3c0   :  { %1220 = vmatpush3.bf16.msra.mxu1 %v1542_v8 }
 0x3c1   :  { %1221 = vmatprep.subr.bf16.mxu1 %v1463_v0 }
 0x3c4   :  { %1222 = vmatpush3.bf16.msra.mxu1 %v1545_v10 }
 0x3c5   :  { %1223 = vmatprep.subr.bf16.mxu1 %v1463_v0 }
 0x3c8   :  { %1224 = vmatpush3.bf16.msra.mxu1 %v1549_v13 }
 0x3c9   :  { %1225 = vmatprep.subr.bf16.mxu1 %v1463_v0 }
 0x3cc   :  { %1226 = vmatpush3.bf16.msra.mxu1 %v1553_v15 }
 0x3cd   :  { %1227 = vmatprep.subr.bf16.mxu1 %v1463_v0 }
 0x3d0   :  { %1228 = vmatpush3.bf16.msra.mxu1 %v1557_v17 }
 0x3d1   :  { %1253 = vmatprep.subr.bf16.mxu1 %v1463_v0 }
 0x473   :  { %v633_v34 = vpop.f32.mrf.mxu1 }
 0x474   :  { %v640_v35 = vadd.f32 %v633_v34, %v288_v33 }
 0x475   :  { %v1191_v36 = vpop.f32.mrf.mxu1 }
 0x476   :  { %1333 = vtanh.f32 %v640_v35 }
 0x477   :  { %v636_v38 = vpop.f32.mrf.mxu1 }
 0x478   :  { %v641_v39 = vadd.f32 %v636_v38, %v291_v37 }
 0x479   :  { %v1192_v40 = vpop.f32.mrf.mxu1 }
 0x47a   :  { %1335 = vtanh.f32 %v641_v39 }
 0x483   :  { %v1334_v41 = vpop.eup %1333 }
 0x487   :  { %v1336_v42 = vpop.eup %1335 }
 0x488   :  { %v647_v43 = vpack.c.bf16 %v1336_v42, %v1334_v41 }
 0x48a   :  { %1210 = vmatmul.mubr.bf16.vlgmr.msra.gmra.mxu0 %v647_v43 }
 0x48b   :  { %1234 = vmatpush3.bf16.msra.mxu0 %v1531_v2  ;;  %1249 = vmatprep.mubr.msk.bf16.mxu0 %vm1464_vm0, %v1463_v0  ;;  %v296_v2 = vadd.f32 %v1629_v46, %v1603_v28  ;;  %v1310_v46 = vld [vmem:[#allocation10 + $0x30] sm:$0xff]  }
 0x48c   :  { %1235 = vmatprep.subr.bf16.mxu0 %v1463_v0 }
 0x48f   :  { %1236 = vmatpush3.bf16.msra.mxu0 %v1534_v4 }
 0x490   :  { %1237 = vmatprep.subr.bf16.mxu0 %v1463_v0 }
 0x493   :  { %1238 = vmatpush3.bf16.msra.mxu0 %v1538_v6 }
 0x494   :  { %1239 = vmatprep.subr.bf16.mxu0 %v1463_v0 }
 0x497   :  { %1240 = vmatpush3.bf16.msra.mxu0 %v1542_v8 }
 0x498   :  { %1241 = vmatprep.subr.bf16.mxu0 %v1463_v0 }
 0x49b   :  { %1242 = vmatpush3.bf16.msra.mxu0 %v1545_v10  ;;  %v299_v10 = vadd.f32 %v1633_v48, %v1603_v28  ;;  %v304_v48 = vadd.f32 %v1603_v28, %v1639_v51  ;;  %v1312_v51 = vld [vmem:[#allocation10 + $0x20] sm:$0xff]  }
 0x49c   :  { %1243 = vmatprep.subr.bf16.mxu0 %v1463_v0 }
 0x49f   :  { %1244 = vmatpush3.bf16.msra.mxu0 %v1549_v13 }
 0x4a0   :  { %1245 = vmatprep.subr.bf16.mxu0 %v1463_v0 }
 0x4a3   :  { %1246 = vmatpush3.bf16.msra.mxu0 %v1553_v15 }
 0x4a4   :  { %1247 = vmatprep.subr.bf16.mxu0 %v1463_v0 }
 0x4a7   :  { %1248 = vmatpush3.bf16.msra.mxu0 %v1557_v17  ;;  %v1309_v17 = vld [vmem:[#allocation10 + $0x38] sm:$0xff]  }
 0x54a   :  { %v682_v4 = vpop.f32.mrf.mxu0 }
 0x54b   :  { %v689_v6 = vadd.f32 %v682_v4, %v296_v2 }
 0x54c   :  { %v1211_v8 = vpop.f32.mrf.mxu0 }
 0x54d   :  { %1337 = vtanh.f32 %v689_v6 }
 0x54e   :  { %v685_v44 = vpop.f32.mrf.mxu0 }
 0x54f   :  { %v690_v45 = vadd.f32 %v685_v44, %v299_v10 }
 0x550   :  { %v1212_v13 = vpop.f32.mrf.mxu0 }
 0x551   :  { %1339 = vtanh.f32 %v690_v45 }
 0x55a   :  { %v1338_v47 = vpop.eup %1337 }
 0x55e   :  { %v1340_v15 = vpop.eup %1339 }
 0x55f   :  { %v696_v49 = vpack.c.bf16 %v1340_v15, %v1338_v47 }
 0x561   :  { %1230 = vmatmul.mubr.bf16.vlgmr.msra.gmra.mxu1 %v696_v49 }
 0x562   :  { %1269 = vmatprep.mubr.msk.bf16.mxu1 %vm1464_vm0, %v1463_v0  ;;  %1254 = vmatpush3.bf16.msra.mxu1 %v1309_v17 }
 0x563   :  { %1255 = vmatprep.subr.bf16.mxu1 %v1463_v0 }
 0x566   :  { %1256 = vmatpush3.bf16.msra.mxu1 %v1310_v46 }
 0x567   :  { %1257 = vmatprep.subr.bf16.mxu1 %v1463_v0 }
 0x56a   :  { %1258 = vmatpush3.bf16.msra.mxu1 %v1311_v1 }
 0x56b   :  { %1259 = vmatprep.subr.bf16.mxu1 %v1463_v0 }
 0x56e   :  { %1260 = vmatpush3.bf16.msra.mxu1 %v1312_v51 }
 0x56f   :  { %1261 = vmatprep.subr.bf16.mxu1 %v1463_v0 }
 0x572   :  { %1262 = vmatpush3.bf16.msra.mxu1 %v1313_v3 }
 0x573   :  { %1263 = vmatprep.subr.bf16.mxu1 %v1463_v0 }
 0x576   :  { %1264 = vmatpush3.bf16.msra.mxu1 %v1314_v53 }
 0x577   :  { %1265 = vmatprep.subr.bf16.mxu1 %v1463_v0 }
 0x57a   :  { %1266 = vmatpush3.bf16.msra.mxu1 %v1315_v5 }
 0x57b   :  { %1267 = vmatprep.subr.bf16.mxu1 %v1463_v0  ;;  %v955_v0 = vld [vmem:[%s1760_s5] ss:$0 sm:$0xff] }
 0x57e   :  { %1268 = vmatpush3.bf16.msra.mxu1 %v1316_v7 }
 0x621   :  { %v731_v54 = vpop.f32.mrf.mxu1 }
 0x622   :  { %v738_v55 = vadd.f32 %v731_v54, %v304_v48 }
 0x623   :  { %v1231_v56 = vpop.f32.mrf.mxu1 }
 0x624   :  { %1341 = vtanh.f32 %v738_v55 }
 0x625   :  { %v734_v58 = vpop.f32.mrf.mxu1 }
 0x626   :  { %v739_v59 = vadd.f32 %v734_v58, %v307_v57 }
 0x627   :  { %v1232_v60 = vpop.f32.mrf.mxu1 }
 0x628   :  { %1343 = vtanh.f32 %v739_v59 }
 0x631   :  { %v1342_v61 = vpop.eup %1341 }
 0x635   :  { %v1344_v62 = vpop.eup %1343 }
 0x636   :  { %v745_v63 = vpack.c.bf16 %v1344_v62, %v1342_v61 }
 0x638   :  { %1250 = vmatmul.mubr.bf16.vlgmr.msra.gmra.mxu0 %v745_v63 }
 0x6f8   :  { %v780_v11 = vpop.f32.mrf.mxu0 }
 0x6f9   :  { %v787_v12 = vadd.f32 %v780_v11, %v312_v9 }
 0x6fa   :  { %v1251_v14 = vpop.f32.mrf.mxu0 }
 0x6fb   :  { %1345 = vtanh.f32 %v787_v12 }
 0x6fc   :  { %v783_v18 = vpop.f32.mrf.mxu0 }
 0x6fd   :  { %v788_v19 = vadd.f32 %v783_v18, %v315_v16 }
 0x6fe   :  { %v1252_v20 = vpop.f32.mrf.mxu0 }
 0x6ff   :  { %1347 = vtanh.f32 %v788_v19 }
 0x708   :  { %v1346_v21 = vpop.eup %1345 }
 0x70c   :  { %v1348_v22 = vpop.eup %1347 }
 0x70d   :  { %v796_v23 = vpack.c.bf16 %v1348_v22, %v1346_v21 }
 0x70f   :  { %1270 = vmatmul.mubr.bf16.vlgmr.msra.gmra.mxu1 %v796_v23 }
 0x7cf   :  { %v902_v50 = vpop.f32.mrf.mxu1 }
 0x7d0   :  { %v903_v24 = vadd.f32 %v955_v0, %v902_v50 }
 0x7d1   :  { %v1271_v25 = vpop.f32.mrf.mxu1 }
 0x7d2   :  { %909 = vst [vmem:[#allocation12] sm:$0xff] %v903_v24 }
 0x7d3   :  { %v905_v28 = vpop.f32.mrf.mxu1 }
 0x7d4   :  { %v906_v52 = vadd.f32 %v955_v0, %v905_v28 }
 0x7d5   :  { %v1272_v26 = vpop.f32.mrf.mxu1 }
 0x7d6   :  { %910 = vst [vmem:[#allocation12 + $0x8] sm:$0xff] %v906_v52 }
 0x7d7   :  { %1440 = shalt.err (!%p1437_p10)
}
 0x7d8   :  { %s1467_s21 = smov 128   ;;  %s1468_s5 = smov 8  }
 0x7d9   :  { %922 = dma.vmem_to_hbm [thread:$0]  %s917_s19, 256, %s1761_s6, [#allocation6], %s1467_s21, %s1467_s21, %s1468_s5  }
 0x7da   :  { %1455 = dma.done.wait [#allocation6], 256  }
 0x7db   :  { %1456 = vsyncadd [#allocation6], 4294967040 }
 0x7dc   :  { %926 = vsyncpa [#allocation5], 1 }
 0x7dd   :  { %927 = vsyncpa [#allocation8], 1 }
 0x7de   :  { %928 = vsyncpa [#allocation11], 1 }
 0x7df   :  { %929 = vsyncpa [#allocation6], 1 }

</bundles_post_ra>
